<compile_context>
chip_gen: v6e
topology: v6e:2x2x1
jax: 0.10.0
libtpu: 0.0.40
codegen_flags: <defaults>
</compile_context>

<pallas_src>
import functools

import jax
import jax.numpy as jnp
from jax.experimental import pallas as pl
from jax.experimental.pallas import tpu as pltpu


def _round_up(n, m):
    return ((n + m - 1) // m) * m


def _cdiv(a, b):
    return -(-a // b)


def _pad2d(a, rows, cols, fill=0.0):
    out = jnp.full((rows, cols), fill, a.dtype)
    return out.at[: a.shape[0], : a.shape[1]].set(a)


def actor_kernel(x_ref, w1_ref, b1_ref, w2_ref, b2_ref, w3_ref, b3_ref, o_ref):
    # fc1 + ReLU   (Dropout = identity in eval)
    h1 = jnp.dot(x_ref[...], w1_ref[...], preferred_element_type=jnp.float32)
    h1 = jnp.maximum(h1 + b1_ref[...], 0.0)

    # fc2 + ReLU   (Dropout = identity in eval)
    h2 = jnp.dot(h1.astype(jnp.bfloat16), w2_ref[...],
                 preferred_element_type=jnp.float32)
    h2 = jnp.maximum(h2 + b2_ref[...], 0.0)

    # fc3 logits (padded action columns carry f32 bias -1e30 -> softmax weight 0)
    logits = jnp.dot(h2.astype(jnp.bfloat16), w3_ref[...],
                     preferred_element_type=jnp.float32) + b3_ref[...]

    # numerically-stable softmax over the (padded) action axis
    m = jnp.max(logits, axis=-1, keepdims=True)
    e = jnp.exp(logits - m)
    denom = jnp.sum(e, axis=-1, keepdims=True)
    o_ref[...] = (e * pl.reciprocal(denom, approx=True)).astype(o_ref.dtype)


def prepare_actor_params(w1, b1, w2, b2, w3, b3):
    """Pad feature dims to 128 and cast weights to bf16 ONCE (hoisted out of per-call path)."""
    state_size, hidden = w1.shape
    num_actions = w3.shape[1]
    s_pad = _round_up(state_size, 128)
    h_pad = _round_up(hidden, 128)
    a_pad = _round_up(num_actions, 128)

    w1_p = _pad2d(w1, s_pad, h_pad).astype(jnp.bfloat16)
    b1_p = _pad2d(b1.reshape(1, -1), 1, h_pad)                     # f32
    w2_p = _pad2d(w2, h_pad, h_pad).astype(jnp.bfloat16)
    b2_p = _pad2d(b2.reshape(1, -1), 1, h_pad)                     # f32
    w3_p = _pad2d(w3, h_pad, a_pad).astype(jnp.bfloat16)
    b3_p = _pad2d(b3.reshape(1, -1), 1, a_pad, fill=-1e30)         # f32, padded logits -> exp()==0
    return w1_p, b1_p, w2_p, b2_p, w3_p, b3_p


def _choose_tiling(batch, tile_b_max):
    """Adaptive batch tiling: pad rows to x16 (bf16 sublane), >=2 tiles for medium/large batches (v7x)."""
    b16 = _round_up(max(batch, 1), 16)
    n_tiles = max(1, _cdiv(b16, tile_b_max))
    if n_tiles == 1 and b16 >= 256:
        n_tiles = 2                                 # keep both v7x TensorCores busy
    tile_b = _round_up(_cdiv(b16, n_tiles), 16)
    b_pad = tile_b * n_tiles
    return b_pad, tile_b, n_tiles


@functools.partial(jax.jit, static_argnames=("num_actions", "tile_b_max"))
def actor_forward(x, w1_p, b1_p, w2_p, b2_p, w3_p, b3_p, *, num_actions, tile_b_max=1024):
    batch = x.shape[0]
    s_pad = w1_p.shape[0]
    h_pad = w1_p.shape[1]
    a_pad = w3_p.shape[1]

    b_pad, tile_b, n_tiles = _choose_tiling(batch, tile_b_max)

    # bf16 activation stream: half the per-tile DMA bytes of the only streamed input.
    x_p = _pad2d(x.astype(jnp.bfloat16), b_pad, s_pad)

    bytes_accessed = (
        x_p.size * 2
        + (w1_p.size + w2_p.size + w3_p.size) * 2
        + (b1_p.size + b2_p.size + b3_p.size) * 4
        + b_pad * a_pad * 2
    )
    cost = pl.CostEstimate(
        flops=2 * b_pad * (s_pad * h_pad + h_pad * h_pad + h_pad * a_pad),
        transcendentals=b_pad * (a_pad + 1),          # exp + reciprocal
        bytes_accessed=bytes_accessed,
    )

    out_p = pl.pallas_call(
        actor_kernel,
        out_shape=jax.ShapeDtypeStruct((b_pad, a_pad), jnp.bfloat16),
        grid=(n_tiles,),
        in_specs=[
            pl.BlockSpec((tile_b, s_pad), lambda i: (i, 0)),   # x tiles pipeline through VMEM
            pl.BlockSpec((s_pad, h_pad), lambda i: (0, 0)),    # weights stay VMEM-resident
            pl.BlockSpec((1, h_pad), lambda i: (0, 0)),
            pl.BlockSpec((h_pad, h_pad), lambda i: (0, 0)),
            pl.BlockSpec((1, h_pad), lambda i: (0, 0)),
            pl.BlockSpec((h_pad, a_pad), lambda i: (0, 0)),
            pl.BlockSpec((1, a_pad), lambda i: (0, 0)),
        ],
        out_specs=pl.BlockSpec((tile_b, a_pad), lambda i: (i, 0)),
        compiler_params=pltpu.CompilerParams(
            dimension_semantics=("parallel",),        # batch tiles shard across v7x TCs
            vmem_limit_bytes=32 * 1024 * 1024,        # guardrail vs v7x 64 MiB physical VMEM
        ),
        cost_estimate=cost,
    )(x_p, w1_p, b1_p, w2_p, b2_p, w3_p, b3_p)

    # Preserve the module contract: (batch, num_actions) f32 probabilities.
    return out_p[:batch, :num_actions].astype(jnp.float32)


def init_linear_params(key, fan_in, fan_out):
    """Deterministic init mirroring nn.Linear (uniform +/- 1/sqrt(fan_in))."""
    kw, kb = jax.random.split(key)
    bound = 1.0 / jnp.sqrt(float(fan_in))
    w = jax.random.uniform(kw, (fan_in, fan_out), jnp.float32, -bound, bound)
    b = jax.random.uniform(kb, (1, fan_out), jnp.float32, -bound, bound)
    return w, b


def reference_forward(x, w1, b1, w2, b2, w3, b3):
    h1 = jnp.maximum(x @ w1 + b1, 0.0)
    h2 = jnp.maximum(h1 @ w2 + b2, 0.0)
    logits = h2 @ w3 + b3
    return jax.nn.softmax(logits, axis=-1)


if __name__ == "__main__":
    # Small shapes consistent with the module: state = (batch, width*height)
    batch = 2
    width = height = 4
    state_size = width * height        # 16
    hidden_dims = 120                  # module default
    num_actions = 4

    key = jax.random.PRNGKey(0)
    kx, k1, k2, k3 = jax.random.split(key, 4)

    x = jax.random.normal(kx, (batch, state_size), jnp.float32)
    w1, b1 = init_linear_params(k1, state_size, hidden_dims)
    w2, b2 = init_linear_params(k2, hidden_dims, hidden_dims)
    w3, b3 = init_linear_params(k3, hidden_dims, num_actions)

    # One-time parameter padding / bf16 cast (hoisted out of the per-call path).
    params = jax.block_until_ready(prepare_actor_params(w1, b1, w2, b2, w3, b3))

    out = actor_forward(x, *params, num_actions=num_actions)
    out = jax.block_until_ready(out)

    ref = reference_forward(x, w1, b1, w2, b2, w3, b3)
    assert out.shape == (batch, num_actions)
    # bf16 matmul/output + approx reciprocal -> loose-but-tight-enough tolerances
    assert jnp.allclose(jnp.sum(out, axis=-1), 1.0, atol=1e-2)
    assert jnp.allclose(out, ref, atol=2e-2, rtol=0.0)

    print("KERNEL_OK")
</pallas_src>

<mosaic_0001>
module attributes {stable_mosaic.version = 11 : i64} {
  func.func @actor_kernel(%arg0: i32, %arg1: memref<16x128xbf16, #tpu.memory_space<vmem>>, %arg2: memref<128x128xbf16, #tpu.memory_space<vmem>>, %arg3: memref<1x128xf32, #tpu.memory_space<vmem>>, %arg4: memref<128x128xbf16, #tpu.memory_space<vmem>>, %arg5: memref<1x128xf32, #tpu.memory_space<vmem>>, %arg6: memref<128x128xbf16, #tpu.memory_space<vmem>>, %arg7: memref<1x128xf32, #tpu.memory_space<vmem>>, %arg8: memref<16x128xbf16, #tpu.memory_space<vmem>>) attributes {dimension_semantics = [#tpu.dimension_semantics<parallel>], iteration_bounds = array<i64: 1>, scalar_prefetch = 0 : i64, scratch_operands = 0 : i64, tpu.core_type = #tpu.core_type<tc>, window_params = [{transform_indices = @transform_0, window_bounds = array<i64: 16, 128>}, {pipeline_mode = #tpu.pipeline_mode<synchronous>, transform_indices = @transform_1, window_bounds = array<i64: 128, 128>}, {pipeline_mode = #tpu.pipeline_mode<synchronous>, transform_indices = @transform_2, window_bounds = array<i64: 1, 128>}, {pipeline_mode = #tpu.pipeline_mode<synchronous>, transform_indices = @transform_3, window_bounds = array<i64: 128, 128>}, {pipeline_mode = #tpu.pipeline_mode<synchronous>, transform_indices = @transform_4, window_bounds = array<i64: 1, 128>}, {pipeline_mode = #tpu.pipeline_mode<synchronous>, transform_indices = @transform_5, window_bounds = array<i64: 128, 128>}, {pipeline_mode = #tpu.pipeline_mode<synchronous>, transform_indices = @transform_6, window_bounds = array<i64: 1, 128>}, {transform_indices = @transform_7, window_bounds = array<i64: 16, 128>}]} {
    %c0 = arith.constant 0 : index
    %c0_0 = arith.constant 0 : index
    %0 = vector.load %arg1[%c0, %c0_0] : memref<16x128xbf16, #tpu.memory_space<vmem>>, vector<16x128xbf16>
    %c0_1 = arith.constant 0 : index
    %c0_2 = arith.constant 0 : index
    %1 = vector.load %arg2[%c0_1, %c0_2] : memref<128x128xbf16, #tpu.memory_space<vmem>>, vector<128x128xbf16>
    %cst = arith.constant dense<0.000000e+00> : vector<16x128xf32>
    %2 = tpu.matmul %0, %1, %cst {dimension_numbers = #tpu.dot_dimension_numbers<[1], [0], [0], [1], [0, 0, 1, 1], [], []>} : vector<16x128xbf16>, vector<128x128xbf16>, vector<16x128xf32> -> vector<16x128xf32>
    %c0_3 = arith.constant 0 : index
    %c0_4 = arith.constant 0 : index
    %3 = vector.load %arg3[%c0_3, %c0_4] : memref<1x128xf32, #tpu.memory_space<vmem>>, vector<1x128xf32>
    %4 = vector.broadcast %3 : vector<1x128xf32> to vector<16x128xf32>
    %5 = arith.addf %2, %4 : vector<16x128xf32>
    %cst_5 = arith.constant 0.000000e+00 : f32
    %6 = vector.broadcast %cst_5 : f32 to vector<16x128xf32>
    %7 = arith.maximumf %5, %6 : vector<16x128xf32>
    %8 = arith.truncf %7 : vector<16x128xf32> to vector<16x128xbf16>
    %c0_6 = arith.constant 0 : index
    %c0_7 = arith.constant 0 : index
    %9 = vector.load %arg4[%c0_6, %c0_7] : memref<128x128xbf16, #tpu.memory_space<vmem>>, vector<128x128xbf16>
    %cst_8 = arith.constant dense<0.000000e+00> : vector<16x128xf32>
    %10 = tpu.matmul %8, %9, %cst_8 {dimension_numbers = #tpu.dot_dimension_numbers<[1], [0], [0], [1], [0, 0, 1, 1], [], []>} : vector<16x128xbf16>, vector<128x128xbf16>, vector<16x128xf32> -> vector<16x128xf32>
    %c0_9 = arith.constant 0 : index
    %c0_10 = arith.constant 0 : index
    %11 = vector.load %arg5[%c0_9, %c0_10] : memref<1x128xf32, #tpu.memory_space<vmem>>, vector<1x128xf32>
    %12 = vector.broadcast %11 : vector<1x128xf32> to vector<16x128xf32>
    %13 = arith.addf %10, %12 : vector<16x128xf32>
    %cst_11 = arith.constant 0.000000e+00 : f32
    %14 = vector.broadcast %cst_11 : f32 to vector<16x128xf32>
    %15 = arith.maximumf %13, %14 : vector<16x128xf32>
    %16 = arith.truncf %15 : vector<16x128xf32> to vector<16x128xbf16>
    %c0_12 = arith.constant 0 : index
    %c0_13 = arith.constant 0 : index
    %17 = vector.load %arg6[%c0_12, %c0_13] : memref<128x128xbf16, #tpu.memory_space<vmem>>, vector<128x128xbf16>
    %cst_14 = arith.constant dense<0.000000e+00> : vector<16x128xf32>
    %18 = tpu.matmul %16, %17, %cst_14 {dimension_numbers = #tpu.dot_dimension_numbers<[1], [0], [0], [1], [0, 0, 1, 1], [], []>} : vector<16x128xbf16>, vector<128x128xbf16>, vector<16x128xf32> -> vector<16x128xf32>
    %c0_15 = arith.constant 0 : index
    %c0_16 = arith.constant 0 : index
    %19 = vector.load %arg7[%c0_15, %c0_16] : memref<1x128xf32, #tpu.memory_space<vmem>>, vector<1x128xf32>
    %20 = vector.broadcast %19 : vector<1x128xf32> to vector<16x128xf32>
    %21 = arith.addf %18, %20 : vector<16x128xf32>
    %cst_17 = arith.constant dense<0xFF800000> : vector<16xf32>
    %22 = vector.multi_reduction <maximumf>, %21, %cst_17 [1] : vector<16x128xf32> to vector<16xf32>
    %23 = vector.shape_cast %22 : vector<16xf32> to vector<16x1xf32>
    %24 = vector.broadcast %23 : vector<16x1xf32> to vector<16x128xf32>
    %25 = arith.subf %21, %24 : vector<16x128xf32>
    %26 = math.exp %25 : vector<16x128xf32>
    %cst_18 = arith.constant dense<0.000000e+00> : vector<16xf32>
    %27 = vector.multi_reduction <add>, %26, %cst_18 [1] : vector<16x128xf32> to vector<16xf32>
    %28 = vector.shape_cast %27 : vector<16xf32> to vector<16x1xf32>
    %29 = tpu.reciprocal %28 {approx = true} : vector<16x1xf32> -> vector<16x1xf32>
    %30 = vector.broadcast %29 : vector<16x1xf32> to vector<16x128xf32>
    %31 = arith.mulf %26, %30 : vector<16x128xf32>
    %32 = arith.truncf %31 : vector<16x128xf32> to vector<16x128xbf16>
    %c0_19 = arith.constant 0 : index
    %c0_20 = arith.constant 0 : index
    %33 = vector.load %arg8[%c0_19, %c0_20] : memref<16x128xbf16, #tpu.memory_space<vmem>>, vector<16x128xbf16>
    tpu.vector_store %arg8[%c0_19, %c0_20], %32 {strides = array<i32>} : memref<16x128xbf16, #tpu.memory_space<vmem>>, vector<16x128xbf16>,
    return
  }
  func.func @transform_0(%arg0: i32) -> (i32, i32) {
    %c0_i32 = arith.constant 0 : i32
    %c0_i32_0 = arith.constant 0 : i32
    return %arg0, %c0_i32 : i32, i32
  }
  func.func @transform_1(%arg0: i32) -> (i32, i32) {
    %c0_i32 = arith.constant 0 : i32
    %c0_i32_0 = arith.constant 0 : i32
    %c0_i32_1 = arith.constant 0 : i32
    return %c0_i32, %c0_i32_0 : i32, i32
  }
  func.func @transform_2(%arg0: i32) -> (i32, i32) {
    %c0_i32 = arith.constant 0 : i32
    %c0_i32_0 = arith.constant 0 : i32
    %c0_i32_1 = arith.constant 0 : i32
    return %c0_i32, %c0_i32_0 : i32, i32
  }
  func.func @transform_3(%arg0: i32) -> (i32, i32) {
    %c0_i32 = arith.constant 0 : i32
    %c0_i32_0 = arith.constant 0 : i32
    %c0_i32_1 = arith.constant 0 : i32
    return %c0_i32, %c0_i32_0 : i32, i32
  }
  func.func @transform_4(%arg0: i32) -> (i32, i32) {
    %c0_i32 = arith.constant 0 : i32
    %c0_i32_0 = arith.constant 0 : i32
    %c0_i32_1 = arith.constant 0 : i32
    return %c0_i32, %c0_i32_0 : i32, i32
  }
  func.func @transform_5(%arg0: i32) -> (i32, i32) {
    %c0_i32 = arith.constant 0 : i32
    %c0_i32_0 = arith.constant 0 : i32
    %c0_i32_1 = arith.constant 0 : i32
    return %c0_i32, %c0_i32_0 : i32, i32
  }
  func.func @transform_6(%arg0: i32) -> (i32, i32) {
    %c0_i32 = arith.constant 0 : i32
    %c0_i32_0 = arith.constant 0 : i32
    %c0_i32_1 = arith.constant 0 : i32
    return %c0_i32, %c0_i32_0 : i32, i32
  }
  func.func @transform_7(%arg0: i32) -> (i32, i32) {
    %c0_i32 = arith.constant 0 : i32
    %c0_i32_0 = arith.constant 0 : i32
    return %arg0, %c0_i32 : i32, i32
  }
}

</mosaic_0001>

<bundles_post_ra>
// kernel: actor_forward.1
= control target key start
LH: loop header
LB: loop body
LE: loop exit
PB: predicated region body
PF: predicated region fallthrough
CT: control target
= control target key end

     0   :  { %12 = vsyncpa [#allocation3], 0  ;;  %s781_s0 = inlined_call_operand.vmem [shape: bf16[16,128], index: 0, kind: input, shape index: {}]   ;;  %s782_s1 = inlined_call_operand.hbm [shape: bf16[128,128], index: 1, kind: input, shape index: {}]   ;;  %s783_s2 = inlined_call_operand.vmem [shape: f32[1,128], index: 2, kind: input, shape index: {}]   ;;  %s784_s3 = inlined_call_operand.hbm [shape: bf16[128,128], index: 3, kind: input, shape index: {}]   ;;  %s785_s4 = inlined_call_operand.vmem [shape: f32[1,128], index: 4, kind: input, shape index: {}]   ;;  %s786_s5 = inlined_call_operand.hbm [shape: bf16[128,128], index: 5, kind: input, shape index: {}]   ;;  %s787_s6 = inlined_call_operand.vmem [shape: f32[1,128], index: 6, kind: input, shape index: {}]   ;;  %s788_s7 = inlined_call_operand.vmem [shape: bf16[16,128], index: 7, kind: output, shape index: {}]  }
   0x1   :  { %13 = vsyncpa [#allocation5], 0  ;;  %s680_s24 = smov [#allocation4]   ;;  %s681_s26 = smov [#allocation2]  }
   0x2   :  { %s35_s25 = sshll.u32 %s680_s24, 4  ;;  %s21_s27 = sshll.u32 %s681_s26, 4  ;;  %s36_s25 = int_to_ptr.vmem [resolvable:$true] %s35_s25  ;;  %s22_s27 = int_to_ptr.vmem [resolvable:$true] %s21_s27 }
   0x3   :  { %s624_s28 = scalar_lea.vmem %s36_s25, 1024  ;;  %p629_p1 = scmp.lt.s32.totalorder %s36_s25, %s36_s25 }
   0x4   :  { %p625_p0 = scmp.ne.s32.totalorder %s36_s25, %s624_s28  ;;  %p630_p2 = scmp.lt.s32.totalorder %s624_s28, %s624_s28 }
   0x6   :  { %p631_p3 = por %p630_p2, %p629_p1 }
   0x8   :  { %p632_p4 = pnand %p631_p3, %p625_p0 }
   0xa   :  { %635 = shalt.err (!%p632_p4)
}
   0xb   :  { %s682_s29 = smov 64   ;;  %s683_s30 = smov 4  }
   0xc   :  { %41 = dma.hbm_to_vmem [thread:$0]  %s784_s3, 1024, %s36_s25, [#allocation5], %s682_s29, %s682_s29, %s683_s30  }
   0xd   :  { %s644_s10 = scalar_lea.vmem %s22_s27, 1024  ;;  %p649_p6 = scmp.lt.s32.totalorder %s22_s27, %s22_s27 }
   0xe   :  { %p645_p5 = scmp.ne.s32.totalorder %s22_s27, %s644_s10  ;;  %p650_p7 = scmp.lt.s32.totalorder %s644_s10, %s644_s10 }
  0x10   :  { %p651_p8 = por %p650_p7, %p649_p6 }
  0x12   :  { %p652_p9 = pnand %p651_p8, %p645_p5 }
  0x14   :  { %655 = shalt.err (!%p652_p9)
}
  0x15   :  { %27 = dma.hbm_to_vmem [thread:$0]  %s782_s1, 1024, %s22_s27, [#allocation3], %s682_s29, %s682_s29, %s683_s30  }
  0x16   :  { %s684_s13 = smov [#allocation6]  }
  0x17   :  { %s49_s14 = sshll.u32 %s684_s13, 4  ;;  %s50_s14 = int_to_ptr.vmem [resolvable:$true] %s49_s14 }
  0x18   :  { %s664_s15 = scalar_lea.vmem %s50_s14, 1024  ;;  %p669_p11 = scmp.lt.s32.totalorder %s50_s14, %s50_s14 }
  0x19   :  { %p665_p10 = scmp.ne.s32.totalorder %s50_s14, %s664_s15  ;;  %p670_p12 = scmp.lt.s32.totalorder %s664_s15, %s664_s15 }
  0x1b   :  { %p671_p13 = por %p670_p12, %p669_p11 }
  0x1d   :  { %p672_p0 = pnand %p671_p13, %p665_p10 }
  0x1f   :  { %675 = shalt.err (!%p672_p0)
}
  0x20   :  { %55 = dma.hbm_to_vmem [thread:$0]  %s786_s5, 1024, %s50_s14, [#allocation5], %s682_s29, %s682_s29, %s683_s30  }
  0x21   :  { %676 = dma.done.wait [#allocation3], 1024  }
  0x22   :  { %677 = vsyncadd [#allocation3], 4294966272 }
  0x23   :  { %678 = dma.done.wait [#allocation5], 2048  }
  0x24   :  { %679 = vsyncadd [#allocation5], 4294965248  ;;  %v685_v0 = vmov 0.0   ;;  %vm686_vm0 = vmmov 0   ;;  %v583_v1 = vld [vmem:[#allocation2 + $0x38] sm:$0xff]   ;;  %v584_v2 = vld [vmem:[#allocation2 + $0x30] sm:$0xff]  }
  0x25   :  { %516 = vmatprep.subr.bf16.mxu0 %v685_v0  ;;  %532 = vmatprep.mubr.msk.bf16.mxu0 %vm686_vm0, %v685_v0  ;;  %v585_v3 = vld [vmem:[#allocation2 + $0x28] sm:$0xff]   ;;  %v592_v4 = vld [vmem:[#allocation4 + $0x38] sm:$0xff]   ;;  %v586_v5 = vld [vmem:[#allocation2 + $0x20] sm:$0xff]  }
  0x26   :  { %536 = vmatprep.subr.bf16.mxu1 %v685_v0  ;;  %552 = vmatprep.mubr.msk.bf16.mxu1 %vm686_vm0, %v685_v0  ;;  %v593_v6 = vld [vmem:[#allocation4 + $0x30] sm:$0xff]   ;;  %v587_v7 = vld [vmem:[#allocation2 + $0x18] sm:$0xff]   ;;  %v594_v8 = vld [vmem:[#allocation4 + $0x28] sm:$0xff]  }
  0x27   :  { %517 = vmatpush3.bf16.msra.mxu0 %v583_v1  ;;  %537 = vmatpush3.bf16.msra.mxu1 %v592_v4  ;;  %v588_v9 = vld [vmem:[#allocation2 + $0x10] sm:$0xff]   ;;  %v595_v10 = vld [vmem:[#allocation4 + $0x20] sm:$0xff]   ;;  %v589_v11 = vld [vmem:[#allocation2 + $0x8] sm:$0xff]  }
  0x28   :  { %518 = vmatprep.subr.bf16.mxu0 %v685_v0  ;;  %538 = vmatprep.subr.bf16.mxu1 %v685_v0  ;;  %v596_v12 = vld [vmem:[#allocation4 + $0x18] sm:$0xff]   ;;  %v590_v13 = vld [vmem:[#allocation2] sm:$0xff]   ;;  %v597_v15 = vld [vmem:[#allocation4 + $0x10] sm:$0xff]  }
  0x29   :  { %v591_v14 = vld [vmem:[%s781_s0] sm:$0xff]   ;;  %v598_v16 = vld [vmem:[#allocation4 + $0x8] sm:$0xff]   ;;  %v600_v18 = vld [vmem:[#allocation6 + $0x38] sm:$0xff]  }
  0x2a   :  { %v599_v17 = vld [vmem:[#allocation4] sm:$0xff]   ;;  %v601_v19 = vld [vmem:[#allocation6 + $0x30] sm:$0xff]   ;;  %v602_v20 = vld [vmem:[#allocation6 + $0x28] sm:$0xff]  }
  0x2b   :  { %519 = vmatpush3.bf16.msra.mxu0 %v584_v2  ;;  %539 = vmatpush3.bf16.msra.mxu1 %v593_v6  ;;  %v603_v21 = vld [vmem:[#allocation6 + $0x20] sm:$0xff]   ;;  %v604_v22 = vld [vmem:[#allocation6 + $0x18] sm:$0xff]   ;;  %v605_v33 = vld [vmem:[#allocation6 + $0x10] sm:$0xff]  }
  0x2c   :  { %520 = vmatprep.subr.bf16.mxu0 %v685_v0  ;;  %540 = vmatprep.subr.bf16.mxu1 %v685_v0  ;;  %v452_v23 = vld [vmem:[%s783_s2] ss:$0 sm:$0xff]  ;;  %v606_v34 = vld [vmem:[#allocation6 + $0x8] sm:$0xff]  }
  0x2d   :  { %v607_v35 = vld [vmem:[#allocation6] sm:$0xff]  }
  0x2e   :  { %v462_v36 = vld [vmem:[%s785_s4] ss:$0 sm:$0xff] }
  0x2f   :  { %521 = vmatpush3.bf16.msra.mxu0 %v585_v3  ;;  %541 = vmatpush3.bf16.msra.mxu1 %v594_v8  ;;  %v471_v46 = vld [vmem:[%s787_s6] ss:$0 sm:$0xff] }
  0x30   :  { %522 = vmatprep.subr.bf16.mxu0 %v685_v0  ;;  %542 = vmatprep.subr.bf16.mxu1 %v685_v0 }
  0x33   :  { %523 = vmatpush3.bf16.msra.mxu0 %v586_v5  ;;  %543 = vmatpush3.bf16.msra.mxu1 %v595_v10 }
  0x34   :  { %524 = vmatprep.subr.bf16.mxu0 %v685_v0  ;;  %544 = vmatprep.subr.bf16.mxu1 %v685_v0 }
  0x37   :  { %525 = vmatpush3.bf16.msra.mxu0 %v587_v7  ;;  %545 = vmatpush3.bf16.msra.mxu1 %v596_v12 }
  0x38   :  { %526 = vmatprep.subr.bf16.mxu0 %v685_v0  ;;  %546 = vmatprep.subr.bf16.mxu1 %v685_v0 }
  0x3b   :  { %527 = vmatpush3.bf16.msra.mxu0 %v588_v9  ;;  %547 = vmatpush3.bf16.msra.mxu1 %v597_v15 }
  0x3c   :  { %528 = vmatprep.subr.bf16.mxu0 %v685_v0  ;;  %548 = vmatprep.subr.bf16.mxu1 %v685_v0 }
  0x3f   :  { %529 = vmatpush3.bf16.msra.mxu0 %v589_v11  ;;  %549 = vmatpush3.bf16.msra.mxu1 %v598_v16 }
  0x40   :  { %530 = vmatprep.subr.bf16.mxu0 %v685_v0  ;;  %550 = vmatprep.subr.bf16.mxu1 %v685_v0 }
  0x43   :  { %531 = vmatpush3.bf16.msra.mxu0 %v590_v13  ;;  %551 = vmatpush3.bf16.msra.mxu1 %v599_v17 }
  0x44   :  { %556 = vmatprep.subr.bf16.mxu0 %v685_v0 }
  0x46   :  { %533 = vmatmul.mubr.bf16.vlgmr.msra.gmra.mxu0 %v591_v14 }
  0x47   :  { %572 = vmatprep.mubr.msk.bf16.mxu0 %vm686_vm0, %v685_v0  ;;  %557 = vmatpush3.bf16.msra.mxu0 %v600_v18 }
  0x48   :  { %558 = vmatprep.subr.bf16.mxu0 %v685_v0 }
  0x4b   :  { %559 = vmatpush3.bf16.msra.mxu0 %v601_v19 }
  0x4c   :  { %560 = vmatprep.subr.bf16.mxu0 %v685_v0 }
  0x4f   :  { %561 = vmatpush3.bf16.msra.mxu0 %v602_v20 }
  0x50   :  { %562 = vmatprep.subr.bf16.mxu0 %v685_v0 }
  0x53   :  { %563 = vmatpush3.bf16.msra.mxu0 %v603_v21 }
  0x54   :  { %564 = vmatprep.subr.bf16.mxu0 %v685_v0 }
  0x57   :  { %565 = vmatpush3.bf16.msra.mxu0 %v604_v22 }
  0x58   :  { %566 = vmatprep.subr.bf16.mxu0 %v685_v0 }
  0x5b   :  { %567 = vmatpush3.bf16.msra.mxu0 %v605_v33 }
  0x5c   :  { %568 = vmatprep.subr.bf16.mxu0 %v685_v0 }
  0x5f   :  { %569 = vmatpush3.bf16.msra.mxu0 %v606_v34 }
  0x60   :  { %570 = vmatprep.subr.bf16.mxu0 %v685_v0 }
  0x63   :  { %571 = vmatpush3.bf16.msra.mxu0 %v607_v35 }
 0x106   :  { %v181_v24 = vpop.f32.mrf.mxu0 }
 0x107   :  { %v182_v26 = vadd.f32 %v452_v23, %v181_v24 }
 0x108   :  { %v534_v25 = vpop.f32.mrf.mxu0 }
 0x109   :  { %v188_v30 = vmax.f32 %v182_v26, 0.0 }
 0x10a   :  { %v184_v27 = vpop.f32.mrf.mxu0 }
 0x10b   :  { %v185_v28 = vadd.f32 %v452_v23, %v184_v27 }
 0x10c   :  { %v535_v29 = vpop.f32.mrf.mxu0 }
 0x10d   :  { %v189_v31 = vmax.f32 %v185_v28, 0.0 }
 0x10f   :  { %v190_v32 = vpack.c.bf16 %v189_v31, %v188_v30 }
 0x111   :  { %553 = vmatmul.mubr.bf16.vlgmr.msra.gmra.mxu1 %v190_v32 }
 0x1d1   :  { %v296_v37 = vpop.f32.mrf.mxu1 }
 0x1d2   :  { %v297_v39 = vadd.f32 %v462_v36, %v296_v37 }
 0x1d3   :  { %v554_v38 = vpop.f32.mrf.mxu1 }
 0x1d4   :  { %v303_v43 = vmax.f32 %v297_v39, 0.0 }
 0x1d5   :  { %v299_v40 = vpop.f32.mrf.mxu1 }
 0x1d6   :  { %v300_v41 = vadd.f32 %v462_v36, %v299_v40 }
 0x1d7   :  { %v555_v42 = vpop.f32.mrf.mxu1 }
 0x1d8   :  { %v304_v44 = vmax.f32 %v300_v41, 0.0 }
 0x1da   :  { %v305_v45 = vpack.c.bf16 %v304_v44, %v303_v43 }
 0x1dc   :  { %573 = vmatmul.mubr.bf16.vlgmr.msra.gmra.mxu0 %v305_v45 }
 0x29c   :  { %v411_v47 = vpop.f32.mrf.mxu0 }
 0x29d   :  { %v412_v48 = vadd.f32 %v471_v46, %v411_v47 }
 0x29e   :  { %v574_v49 = vpop.f32.mrf.mxu0 }
 0x29f   :  { %418 = vmax.xlane.f32.xlu0 %v412_v48 }
 0x2a0   :  { %v414_v50 = vpop.f32.mrf.mxu0 }
 0x2a1   :  { %v415_v51 = vadd.f32 %v471_v46, %v414_v50 }
 0x2a2   :  { %v575_v52 = vpop.f32.mrf.mxu0 }
 0x2a3   :  { %420 = vmax.xlane.f32.xlu0 %v415_v51 }
 0x328   :  { %v419_v53 = vpop.xlane.xlu0 %418 }
 0x329   :  { %v422_v54 = vsub.f32 %v412_v48, %v419_v53 }
 0x32b   :  { %v424_v55 = vmul.f32 1.442695, %v422_v54 }
 0x32c   :  { %v421_v56 = vpop.xlane.xlu0 %420 }
 0x32d   :  { %608 = vpow2.f32 %v424_v55  ;;  %v423_v57 = vsub.f32 %v415_v51, %v421_v56 }
 0x32f   :  { %v426_v58 = vmul.f32 1.442695, %v423_v57 }
 0x331   :  { %610 = vpow2.f32 %v426_v58 }
 0x33a   :  { %v609_v59 = vpop.eup %608 }
 0x33b   :  { %428 = vadd.xlane.f32.xlu1 %v609_v59 }
 0x33e   :  { %v611_v60 = vpop.eup %610 }
 0x33f   :  { %430 = vadd.xlane.f32.xlu1 %v611_v60 }
 0x3c4   :  { %v429_v61 = vpop.xlane.xlu1 %428 }
 0x3c5   :  { %612 = vrcp.f32 %v429_v61 }
 0x3c8   :  { %v431_v62 = vpop.xlane.xlu1 %430 }
 0x3c9   :  { %614 = vrcp.f32 %v431_v62 }
 0x3d2   :  { %v613_v63 = vpop.eup %612 }
 0x3d3   :  { %v434_v1 = vmul.f32 %v613_v63, %v609_v59 }
 0x3d6   :  { %v615_v0 = vpop.eup %614 }
 0x3d7   :  { %v435_v2 = vmul.f32 %v615_v0, %v611_v60 }
 0x3d9   :  { %v487_v3 = vpack.c.bf16 %v435_v2, %v434_v1 }
 0x3db   :  { %488 = vst [vmem:[%s788_s7] sm:$0xff] %v487_v3  }
 0x3dc   :  { %450 = vsyncpa [#allocation3], 1 }
 0x3dd   :  { %451 = vsyncpa [#allocation5], 1 }

</bundles_post_ra>
